<compile_context>
chip_gen: v6e
topology: v6e:2x2x1
jax: 0.10.0
libtpu: 0.0.40
codegen_flags: <defaults>
</compile_context>

<pallas_src>
import jax
import jax.numpy as jnp
from jax.experimental import pallas as pl
from jax.experimental.pallas import tpu as pltpu

INPUT_SIZE = 784
HIDDEN_SIZE = 256
BN_EPS = 1e-5


def net1_kernel(x_ref, w_ref, gb_ref, o_ref):
    # x_ref:  (B, INPUT_SIZE)  f32/bf16  full batch, full feature dim
    # w_ref:  (INPUT_SIZE, TH) bf16      one tile of the hidden dimension
    # gb_ref: (2, TH)          f32       row 0 = gamma, row 1 = beta
    # o_ref:  (B, TH)          f32
    x = x_ref[...].astype(jnp.bfloat16)   # bf16 MXU operands, f32 accumulation
    w = w_ref[...]

    # Linear (bias omitted: cancels exactly against the BN batch-mean subtraction).
    y = jnp.dot(x, w, preferred_element_type=jnp.float32)

    # BatchNorm1d, training mode, single-pass statistics.
    b = y.shape[0]
    inv_b = 1.0 / b
    s1 = jnp.sum(y, axis=0, keepdims=True)
    s2 = jnp.sum(y * y, axis=0, keepdims=True)      # independent XLU reductions
    mean = s1 * inv_b
    var = jnp.maximum(s2 * inv_b - mean * mean, 0.0)  # clamp rounding negatives
    inv_std = jax.lax.rsqrt(var + BN_EPS)             # EUP slot (free-ish)

    gb = gb_ref[...]
    gamma = gb[0:1, :]
    beta = gb[1:2, :]

    # Folded affine: one multiply-add per element over the (B, TH) tile.
    scale = gamma * inv_std                 # (1, TH)
    shift = beta - mean * scale             # (1, TH)
    o_ref[...] = jnp.maximum(y * scale + shift, 0.0).astype(o_ref.dtype)


def _default_tile_h():
    """128 on v7x (engage both TensorCores via grid=(2,)), 256 elsewhere."""
    try:
        kind = jax.devices()[0].device_kind.lower()
    except Exception:
        return HIDDEN_SIZE
    if "v7" in kind:
        return 128
    return HIDDEN_SIZE


def prepare_params(w, b, gamma, beta):
    """One-time parameter preprocessing.  Call at init, NOT per forward.

    Returns (w_bf16, gb) where gb = stacked [gamma; beta] in f32.
    The Linear bias `b` is accepted for interface parity but never sent to the
    device: under training-mode BatchNorm it shifts y and the batch mean
    identically, so it cancels exactly.
    """
    del b  # algebraically redundant under training-mode BatchNorm
    H = w.shape[1]
    w_bf16 = w.astype(jnp.bfloat16)
    gb = jnp.concatenate(
        [gamma.reshape(1, H), beta.reshape(1, H)], axis=0
    ).astype(jnp.float32)
    return w_bf16, gb


def net1_forward(x, w_bf16, gb, *, tile_h=None):
    """Forward pass of Net1 given pre-prepared params (see `prepare_params`)."""
    B, D = x.shape
    H = w_bf16.shape[1]
    assert D == w_bf16.shape[0]
    if tile_h is None:
        tile_h = _default_tile_h()
    tile_h = min(tile_h, H)
    assert H % tile_h == 0
    assert tile_h >= 128, "lane width below 128 would force masked stores"
    # BN batch statistics are only correct because the batch dim is NOT tiled:
    # the x / out BlockSpecs below always present the full (B, ...) batch.

    grid = (H // tile_h,)

    cost = pl.CostEstimate(
        flops=2 * B * D * H,
        transcendentals=H,                              # rsqrt per feature
        bytes_accessed=(B * D * x.dtype.itemsize)       # x (f32 or bf16)
        + (D * H * 2)                                   # W (bf16)
        + (2 * H * 4)                                   # fused gamma/beta
        + (B * H * 4),                                  # output
    )

    return pl.pallas_call(
        net1_kernel,
        out_shape=jax.ShapeDtypeStruct((B, H), jnp.float32),
        grid_spec=pltpu.PrefetchScalarGridSpec(
            num_scalar_prefetch=0,
            grid=grid,
            in_specs=[
                pl.BlockSpec((B, D), lambda j: (0, 0)),        # x: full batch
                pl.BlockSpec((D, tile_h), lambda j: (0, j)),   # W tile (bf16)
                pl.BlockSpec((2, tile_h), lambda j: (0, j)),   # fused gamma/beta
            ],
            out_specs=pl.BlockSpec((B, tile_h), lambda j: (0, j)),
        ),
        compiler_params=pltpu.CompilerParams(
            # H-tiles are independent (BN stats are per-feature), so the grid is
            # safe to shard across cores when it has >1 step (v7x: grid=(2,)).
            dimension_semantics=("parallel",),
        ),
        cost_estimate=cost,
    )(x, w_bf16, gb)


def reference_forward(x, w, b, gamma, beta):
    # Training-mode BatchNorm1d (batch statistics, biased variance), as in the
    # default nn.Module training state.  Bias included here; it cancels.
    y = jnp.dot(x, w, precision=jax.lax.Precision.HIGHEST) + b
    mean = jnp.mean(y, axis=0, keepdims=True)
    var = jnp.mean((y - mean) ** 2, axis=0, keepdims=True)
    y_hat = (y - mean) / jnp.sqrt(var + BN_EPS)
    return jnp.maximum(y_hat * gamma + beta, 0.0)


if __name__ == "__main__":
    key = jax.random.PRNGKey(0)
    k_x, k_w, k_b = jax.random.split(key, 3)

    B = 8  # small batch

    # Deterministic parameter init (PyTorch-Linear-like uniform bounds).
    bound = 1.0 / (INPUT_SIZE ** 0.5)
    w = jax.random.uniform(
        k_w, (INPUT_SIZE, HIDDEN_SIZE), jnp.float32, -bound, bound)
    b = jax.random.uniform(
        k_b, (1, HIDDEN_SIZE), jnp.float32, -bound, bound)
    gamma = jnp.ones((1, HIDDEN_SIZE), jnp.float32)   # BatchNorm weight init
    beta = jnp.zeros((1, HIDDEN_SIZE), jnp.float32)   # BatchNorm bias init

    x = jax.random.normal(k_x, (B, INPUT_SIZE), jnp.float32)

    # One-time parameter prep (hoisted out of the per-call path).
    w_bf16, gb = jax.block_until_ready(prepare_params(w, b, gamma, beta))

    out = net1_forward(x, w_bf16, gb)
    out = jax.block_until_ready(out)
    assert out.shape == (B, HIDDEN_SIZE)

    # Tight check: reference fed the same bf16-rounded operands the kernel uses
    # (isolates kernel math from the deliberate bf16 weight-streaming choice).
    x_q = x.astype(jnp.bfloat16).astype(jnp.float32)
    w_q = w.astype(jnp.bfloat16).astype(jnp.float32)
    ref_q = reference_forward(x_q, w_q, b, gamma, beta)
    assert jnp.allclose(out, ref_q, atol=2e-3, rtol=2e-3), "mismatch vs bf16 reference"

    # Loose check: exact f32 module forward; the only deviation is the bf16
    # operand rounding (accumulation stays f32).
    ref = reference_forward(x, w, b, gamma, beta)
    assert jnp.allclose(out, ref, atol=5e-2, rtol=5e-2), "mismatch vs f32 reference"

    print("KERNEL_OK")
</pallas_src>

<mosaic_0001>
module attributes {stable_mosaic.version = 11 : i64} {
  func.func @net1_kernel(%arg0: i32, %arg1: memref<8x784xf32, #tpu.memory_space<vmem>>, %arg2: memref<784x256xbf16, #tpu.memory_space<vmem>>, %arg3: memref<2x256xf32, #tpu.memory_space<vmem>>, %arg4: memref<8x256xf32, #tpu.memory_space<vmem>>) attributes {dimension_semantics = [#tpu.dimension_semantics<parallel>], iteration_bounds = array<i64: 1>, scalar_prefetch = 0 : i64, scratch_operands = 0 : i64, tpu.core_type = #tpu.core_type<tc>, window_params = [{pipeline_mode = #tpu.pipeline_mode<synchronous>, transform_indices = @transform_0, window_bounds = array<i64: 8, 784>}, {transform_indices = @transform_1, window_bounds = array<i64: 784, 256>}, {transform_indices = @transform_2, window_bounds = array<i64: 2, 256>}, {transform_indices = @transform_3, window_bounds = array<i64: 8, 256>}]} {
    %c0 = arith.constant 0 : index
    %c0_0 = arith.constant 0 : index
    %0 = vector.load %arg1[%c0, %c0_0] : memref<8x784xf32, #tpu.memory_space<vmem>>, vector<8x784xf32>
    %1 = arith.truncf %0 : vector<8x784xf32> to vector<8x784xbf16>
    %c0_1 = arith.constant 0 : index
    %c0_2 = arith.constant 0 : index
    %2 = vector.load %arg2[%c0_1, %c0_2] : memref<784x256xbf16, #tpu.memory_space<vmem>>, vector<784x256xbf16>
    %cst = arith.constant dense<0.000000e+00> : vector<8x256xf32>
    %3 = tpu.matmul %1, %2, %cst {dimension_numbers = #tpu.dot_dimension_numbers<[1], [0], [0], [1], [0, 0, 1, 1], [], []>} : vector<8x784xbf16>, vector<784x256xbf16>, vector<8x256xf32> -> vector<8x256xf32>
    %cst_3 = arith.constant dense<0.000000e+00> : vector<256xf32>
    %4 = vector.multi_reduction <add>, %3, %cst_3 [0] : vector<8x256xf32> to vector<256xf32>
    %5 = vector.shape_cast %4 : vector<256xf32> to vector<1x256xf32>
    %6 = arith.mulf %3, %3 : vector<8x256xf32>
    %cst_4 = arith.constant dense<0.000000e+00> : vector<256xf32>
    %7 = vector.multi_reduction <add>, %6, %cst_4 [0] : vector<8x256xf32> to vector<256xf32>
    %8 = vector.shape_cast %7 : vector<256xf32> to vector<1x256xf32>
    %cst_5 = arith.constant 1.250000e-01 : f32
    %9 = vector.broadcast %cst_5 : f32 to vector<1x256xf32>
    %10 = arith.mulf %5, %9 : vector<1x256xf32>
    %cst_6 = arith.constant 1.250000e-01 : f32
    %11 = vector.broadcast %cst_6 : f32 to vector<1x256xf32>
    %12 = arith.mulf %8, %11 : vector<1x256xf32>
    %13 = arith.mulf %10, %10 : vector<1x256xf32>
    %14 = arith.subf %12, %13 : vector<1x256xf32>
    %cst_7 = arith.constant 0.000000e+00 : f32
    %15 = vector.broadcast %cst_7 : f32 to vector<1x256xf32>
    %16 = arith.maximumf %14, %15 : vector<1x256xf32>
    %cst_8 = arith.constant 9.99999974E-6 : f32
    %17 = vector.broadcast %cst_8 : f32 to vector<1x256xf32>
    %18 = arith.addf %16, %17 : vector<1x256xf32>
    %19 = math.rsqrt %18 : vector<1x256xf32>
    %c0_9 = arith.constant 0 : index
    %c0_10 = arith.constant 0 : index
    %20 = vector.load %arg3[%c0_9, %c0_10] : memref<2x256xf32, #tpu.memory_space<vmem>>, vector<2x256xf32>
    %21 = vector.extract_strided_slice %20 {offsets = [0, 0], sizes = [1, 256], strides = [1, 1]} : vector<2x256xf32> to vector<1x256xf32>
    %22 = vector.extract_strided_slice %20 {offsets = [1, 0], sizes = [1, 256], strides = [1, 1]} : vector<2x256xf32> to vector<1x256xf32>
    %23 = arith.mulf %21, %19 : vector<1x256xf32>
    %24 = arith.mulf %10, %23 : vector<1x256xf32>
    %25 = arith.subf %22, %24 : vector<1x256xf32>
    %26 = vector.broadcast %23 : vector<1x256xf32> to vector<8x256xf32>
    %27 = arith.mulf %3, %26 : vector<8x256xf32>
    %28 = vector.broadcast %25 : vector<1x256xf32> to vector<8x256xf32>
    %29 = arith.addf %27, %28 : vector<8x256xf32>
    %cst_11 = arith.constant 0.000000e+00 : f32
    %30 = vector.broadcast %cst_11 : f32 to vector<8x256xf32>
    %31 = arith.maximumf %29, %30 : vector<8x256xf32>
    %c0_12 = arith.constant 0 : index
    %c0_13 = arith.constant 0 : index
    %32 = vector.load %arg4[%c0_12, %c0_13] : memref<8x256xf32, #tpu.memory_space<vmem>>, vector<8x256xf32>
    tpu.vector_store %arg4[%c0_12, %c0_13], %31 {strides = array<i32>} : memref<8x256xf32, #tpu.memory_space<vmem>>, vector<8x256xf32>,
    return
  }
  func.func @transform_0(%arg0: i32) -> (i32, i32) {
    %c0_i32 = arith.constant 0 : i32
    %c0_i32_0 = arith.constant 0 : i32
    %c0_i32_1 = arith.constant 0 : i32
    return %c0_i32, %c0_i32_0 : i32, i32
  }
  func.func @transform_1(%arg0: i32) -> (i32, i32) {
    %c0_i32 = arith.constant 0 : i32
    %c0_i32_0 = arith.constant 0 : i32
    return %c0_i32, %arg0 : i32, i32
  }
  func.func @transform_2(%arg0: i32) -> (i32, i32) {
    %c0_i32 = arith.constant 0 : i32
    %c0_i32_0 = arith.constant 0 : i32
    return %c0_i32, %arg0 : i32, i32
  }
  func.func @transform_3(%arg0: i32) -> (i32, i32) {
    %c0_i32 = arith.constant 0 : i32
    %c0_i32_0 = arith.constant 0 : i32
    return %c0_i32, %arg0 : i32, i32
  }
}

</mosaic_0001>

<bundles_post_ra>
// kernel: tpu_custom_call.1
= control target key start
LH: loop header
LB: loop body
LE: loop exit
PB: predicated region body
PF: predicated region fallthrough
CT: control target
= control target key end

     0   :  { %8 = vsyncpa [#allocation3], 0  ;;  %s1351_s0 = inlined_call_operand.hbm [shape: f32[8,784], index: 0, kind: input, shape index: {}]   ;;  %s1352_s1 = inlined_call_operand.hbm [shape: bf16[784,256], index: 1, kind: input, shape index: {}]   ;;  %s1353_s2 = inlined_call_operand.hbm [shape: f32[2,256], index: 2, kind: input, shape index: {}]   ;;  %s1354_s3 = inlined_call_operand.hbm [shape: f32[8,256], index: 3, kind: output, shape index: {}]  }
   0x1   :  { %9 = vsyncpa [#allocation6], 0 }
   0x2   :  { %10 = vsyncpa [#allocation4], 0  ;;  %s1297_s12 = smov [#allocation5]  }
   0x3   :  { %s26_s13 = sshll.u32 %s1297_s12, 4  ;;  %s27_s13 = int_to_ptr.vmem [resolvable:$true] %s26_s13 }
   0x4   :  { %s1219_s14 = scalar_lea.vmem %s27_s13, 12544  ;;  %p1224_p1 = scmp.lt.s32.totalorder %s27_s13, %s27_s13 }
   0x5   :  { %p1220_p0 = scmp.ne.s32.totalorder %s27_s13, %s1219_s14  ;;  %p1225_p2 = scmp.lt.s32.totalorder %s1219_s14, %s1219_s14 }
   0x7   :  { %p1226_p3 = por %p1225_p2, %p1224_p1 }
   0x9   :  { %p1227_p4 = pnand %p1226_p3, %p1220_p0 }
   0xb   :  { %1230 = shalt.err (!%p1227_p4)
}
   0xc   :  { %s1298_s15 = smov 128   ;;  %s1299_s16 = smov 8  }
   0xd   :  { %32 = dma.hbm_to_vmem [thread:$0]  %s1352_s1, 12544, %s27_s13, [#allocation6], %s1298_s15, %s1298_s15, %s1299_s16  }
   0xe   :  { %s1300_s19 = smov [#allocation2]   ;;  %s1301_s21 = smov [#allocation7]  }
   0xf   :  { %s17_s20 = sshll.u32 %s1300_s19, 4  ;;  %s39_s22 = sshll.u32 %s1301_s21, 4  ;;  %s18_s20 = int_to_ptr.vmem [resolvable:$true] %s17_s20  ;;  %s40_s22 = int_to_ptr.vmem [resolvable:$true] %s39_s22 }
  0x10   :  { %s1239_s23 = scalar_lea.vmem %s18_s20, 896  ;;  %p1244_p6 = scmp.lt.s32.totalorder %s18_s20, %s18_s20 }
  0x11   :  { %p1240_p5 = scmp.ne.s32.totalorder %s18_s20, %s1239_s23  ;;  %p1245_p7 = scmp.lt.s32.totalorder %s1239_s23, %s1239_s23 }
  0x13   :  { %p1246_p8 = por %p1245_p7, %p1244_p6 }
  0x15   :  { %p1247_p9 = pnand %p1246_p8, %p1240_p5 }
  0x17   :  { %1250 = shalt.err (!%p1247_p9)
}
  0x18   :  { %20 = dma.hbm_to_vmem [thread:$0]  %s1351_s0, 896, %s18_s20, [#allocation3]  }
  0x19   :  { %s1259_s26 = scalar_lea.vmem %s40_s22, 64  ;;  %p1264_p11 = scmp.lt.s32.totalorder %s40_s22, %s40_s22 }
  0x1a   :  { %p1260_p10 = scmp.ne.s32.totalorder %s40_s22, %s1259_s26  ;;  %p1265_p12 = scmp.lt.s32.totalorder %s1259_s26, %s1259_s26 }
  0x1c   :  { %p1266_p13 = por %p1265_p12, %p1264_p11 }
  0x1e   :  { %p1267_p0 = pnand %p1266_p13, %p1260_p10 }
  0x20   :  { %1270 = shalt.err (!%p1267_p0)
}
  0x21   :  { %42 = dma.hbm_to_vmem [thread:$0]  %s1353_s2, 64, %s40_s22, [#allocation6]  }
  0x22   :  { %1291 = dma.done.wait [#allocation3], 896  }
  0x23   :  { %1292 = vsyncadd [#allocation3], 4294966400 }
  0x24   :  { %1293 = dma.done.wait [#allocation6], 12608  }
  0x25   :  { %1294 = vsyncadd [#allocation6], 4294954688  ;;  %v1060_v0 = vld [vmem:[#allocation5 + $0x74] ss:$8 sps:$4 sm:$0xff]   ;;  %v1064_v2 = vld [vmem:[#allocation5 + $0x70] ss:$8 sps:$4 sm:$0xff]  }
  0x26   :  { %v1062_v1 = vld [vmem:[#allocation5 + $0x174] ss:$8 sps:$4 sm:$0xff]   ;;  %659 = vmatprep.subr.bf16.mxu0 %v1060_v0  ;;  %v1065_v3 = vld [vmem:[#allocation5 + $0x170] ss:$8 sps:$4 sm:$0xff]   ;;  %v1066_v4 = vld [vmem:[#allocation5 + $0x64] ss:$8 sps:$4 sm:$0xff]  }
  0x27   :  { %700 = vmatprep.subr.bf16.mxu1 %v1062_v1  ;;  %660 = vmatpush1.bf16.msra.mxu0 %v1064_v2  ;;  %v1068_v5 = vld [vmem:[#allocation5 + $0x164] ss:$8 sps:$4 sm:$0xff]   ;;  %v1070_v6 = vld [vmem:[#allocation5 + $0x60] ss:$8 sps:$4 sm:$0xff]   ;;  %v1072_v8 = vld [vmem:[#allocation5 + $0x54] ss:$8 sps:$4 sm:$0xff]  }
  0x28   :  { %701 = vmatpush1.bf16.msra.mxu1 %v1065_v3  ;;  %661 = vmatprep.subr.bf16.mxu0 %v1066_v4  ;;  %v1071_v7 = vld [vmem:[#allocation5 + $0x160] ss:$8 sps:$4 sm:$0xff]   ;;  %v1074_v9 = vld [vmem:[#allocation5 + $0x154] ss:$8 sps:$4 sm:$0xff]   ;;  %v1076_v10 = vld [vmem:[#allocation5 + $0x50] ss:$8 sps:$4 sm:$0xff]  }
  0x29   :  { %702 = vmatprep.subr.bf16.mxu1 %v1068_v5  ;;  %v1077_v11 = vld [vmem:[#allocation5 + $0x150] ss:$8 sps:$4 sm:$0xff]   ;;  %v1078_v12 = vld [vmem:[#allocation5 + $0x44] ss:$8 sps:$4 sm:$0xff]   ;;  %v1082_v14 = vld [vmem:[#allocation5 + $0x40] ss:$8 sps:$4 sm:$0xff]  }
  0x2a   :  { %v1080_v13 = vld [vmem:[#allocation5 + $0x144] ss:$8 sps:$4 sm:$0xff]   ;;  %v1083_v15 = vld [vmem:[#allocation5 + $0x140] ss:$8 sps:$4 sm:$0xff]   ;;  %v1084_v16 = vld [vmem:[#allocation5 + $0x34] ss:$8 sps:$4 sm:$0xff]  }
  0x2b   :  { %662 = vmatpush1.bf16.msra.mxu0 %v1070_v6  ;;  %v1086_v17 = vld [vmem:[#allocation5 + $0x134] ss:$8 sps:$4 sm:$0xff]   ;;  %v1088_v18 = vld [vmem:[#allocation5 + $0x30] ss:$8 sps:$4 sm:$0xff]   ;;  %v1090_v20 = vld [vmem:[#allocation5 + $0x24] ss:$8 sps:$4 sm:$0xff]  }
  0x2c   :  { %703 = vmatpush1.bf16.msra.mxu1 %v1071_v7  ;;  %663 = vmatprep.subr.bf16.mxu0 %v1072_v8  ;;  %v1089_v19 = vld [vmem:[#allocation5 + $0x130] ss:$8 sps:$4 sm:$0xff]   ;;  %v1092_v21 = vld [vmem:[#allocation5 + $0x124] ss:$8 sps:$4 sm:$0xff]   ;;  %v1094_v22 = vld [vmem:[#allocation5 + $0x20] ss:$8 sps:$4 sm:$0xff]  }
  0x2d   :  { %704 = vmatprep.subr.bf16.mxu1 %v1074_v9  ;;  %v1095_v23 = vld [vmem:[#allocation5 + $0x120] ss:$8 sps:$4 sm:$0xff]   ;;  %v1096_v24 = vld [vmem:[#allocation5 + $0x14] ss:$8 sps:$4 sm:$0xff]   ;;  %v1100_v26 = vld [vmem:[#allocation5 + $0x10] ss:$8 sps:$4 sm:$0xff]  }
  0x2e   :  { %v1098_v25 = vld [vmem:[#allocation5 + $0x114] ss:$8 sps:$4 sm:$0xff]   ;;  %v1101_v27 = vld [vmem:[#allocation5 + $0x110] ss:$8 sps:$4 sm:$0xff]   ;;  %v1102_v28 = vld [vmem:[#allocation5 + $0x4] ss:$8 sps:$4 sm:$0xff]  }
  0x2f   :  { %664 = vmatpush1.bf16.msra.mxu0 %v1076_v10  ;;  %v1104_v29 = vld [vmem:[#allocation5 + $0x104] ss:$8 sps:$4 sm:$0xff]   ;;  %v1106_v30 = vld [vmem:[#allocation5] ss:$8 sps:$4 sm:$0xff]   ;;  %v1108_v32 = vld [vmem:[#allocation5 + $0xf4] ss:$8 sps:$4 sm:$0xff]  }
  0x30   :  { %705 = vmatpush1.bf16.msra.mxu1 %v1077_v11  ;;  %665 = vmatprep.subr.bf16.mxu0 %v1078_v12  ;;  %v1107_v31 = vld [vmem:[#allocation5 + $0x100] ss:$8 sps:$4 sm:$0xff]   ;;  %v1110_v33 = vld [vmem:[#allocation5 + $0x1f4] ss:$8 sps:$4 sm:$0xff]   ;;  %v1112_v34 = vld [vmem:[#allocation5 + $0xf0] ss:$8 sps:$4 sm:$0xff]  }
  0x31   :  { %706 = vmatprep.subr.bf16.mxu1 %v1080_v13  ;;  %v1113_v35 = vld [vmem:[#allocation5 + $0x1f0] ss:$8 sps:$4 sm:$0xff]   ;;  %v1114_v36 = vld [vmem:[#allocation5 + $0xe4] ss:$8 sps:$4 sm:$0xff]   ;;  %v1118_v38 = vld [vmem:[#allocation5 + $0xe0] ss:$8 sps:$4 sm:$0xff]  }
  0x32   :  { %v1116_v37 = vld [vmem:[#allocation5 + $0x1e4] ss:$8 sps:$4 sm:$0xff]   ;;  %v1119_v39 = vld [vmem:[#allocation5 + $0x1e0] ss:$8 sps:$4 sm:$0xff]   ;;  %v1120_v40 = vld [vmem:[#allocation5 + $0xd4] ss:$8 sps:$4 sm:$0xff]  }
  0x33   :  { %666 = vmatpush1.bf16.msra.mxu0 %v1082_v14  ;;  %v1122_v41 = vld [vmem:[#allocation5 + $0x1d4] ss:$8 sps:$4 sm:$0xff]   ;;  %v1124_v42 = vld [vmem:[#allocation5 + $0xd0] ss:$8 sps:$4 sm:$0xff]   ;;  %v1126_v44 = vld [vmem:[#allocation5 + $0xc4] ss:$8 sps:$4 sm:$0xff]  }
  0x34   :  { %707 = vmatpush1.bf16.msra.mxu1 %v1083_v15  ;;  %667 = vmatprep.subr.bf16.mxu0 %v1084_v16  ;;  %v1125_v43 = vld [vmem:[#allocation5 + $0x1d0] ss:$8 sps:$4 sm:$0xff]   ;;  %v1128_v45 = vld [vmem:[#allocation5 + $0x1c4] ss:$8 sps:$4 sm:$0xff]   ;;  %v1130_v47 = vld [vmem:[#allocation5 + $0xc0] ss:$8 sps:$4 sm:$0xff]  }
  0x35   :  { %708 = vmatprep.subr.bf16.mxu1 %v1086_v17  ;;  %v54_v46 = vld [vmem:[#allocation2 + $0x8] sm:$0xff]  ;;  %v1131_v48 = vld [vmem:[#allocation5 + $0x1c0] ss:$8 sps:$4 sm:$0xff]   ;;  %v1138_v56 = vld [vmem:[#allocation5 + $0xa4] ss:$8 sps:$4 sm:$0xff]   ;;  %vm655_vm0 = vcmask 130048  }
  0x36   :  { %v61_v49 = vpack.c.bf16 %v54_v46, %v54_v46  ;;  %v56_v50 = vld [vmem:[#allocation2 + $0x18] sm:$0xff]  ;;  %v1132_v51 = vld [vmem:[#allocation5 + $0xb4] ss:$8 sps:$4 sm:$0xff]   ;;  %v1136_v54 = vld [vmem:[#allocation5 + $0xb0] ss:$8 sps:$4 sm:$0xff]   ;;  %s1304_s0 = smov [#allocation8]  }
  0x37   :  { %668 = vmatpush1.bf16.msra.mxu0 %v1088_v18  ;;  %v63_v52 = vpack.c.bf16 %v56_v50, %v56_v50  ;;  %v1134_v53 = vld [vmem:[#allocation5 + $0x1b4] ss:$8 sps:$4 sm:$0xff]   ;;  %v1137_v55 = vld [vmem:[#allocation5 + $0x1b0] ss:$8 sps:$4 sm:$0xff]   ;;  %v1140_v57 = vld [vmem:[#allocation5 + $0x1a4] ss:$8 sps:$4 sm:$0xff]  }
  0x38   :  { %709 = vmatpush1.bf16.msra.mxu1 %v1089_v19  ;;  %669 = vmatprep.subr.bf16.mxu0 %v1090_v20  ;;  %v1142_v58 = vld [vmem:[#allocation5 + $0xa0] ss:$8 sps:$4 sm:$0xff]   ;;  %v1144_v60 = vld [vmem:[#allocation5 + $0x94] ss:$8 sps:$4 sm:$0xff]   ;;  %v1148_v62 = vld [vmem:[#allocation5 + $0x90] ss:$8 sps:$4 sm:$0xff]  }
  0x39   :  { %710 = vmatprep.subr.bf16.mxu1 %v1092_v21  ;;  %691 = vmatprep.mubr.bf16.mxu0 %v61_v49  ;;  %v1143_v59 = vld [vmem:[#allocation5 + $0x1a0] ss:$8 sps:$4 sm:$0xff]   ;;  %v1146_v61 = vld [vmem:[#allocation5 + $0x194] ss:$8 sps:$4 sm:$0xff]   ;;  %v1149_v63 = vld [vmem:[#allocation5 + $0x190] ss:$8 sps:$4 sm:$0xff]  }
  0x3a   :  { %732 = vmatprep.mubr.bf16.mxu1 %v63_v52  ;;  %v1150_v0 = vld [vmem:[#allocation5 + $0x84] ss:$8 sps:$4 sm:$0xff]   ;;  %v1154_v2 = vld [vmem:[#allocation5 + $0x80] ss:$8 sps:$4 sm:$0xff]   ;;  %v55_v5 = vld [vmem:[#allocation2 + $0x10] sm:$0xff]  ;;  %v1302_v18 = vmov 0  }
  0x3b   :  { %670 = vmatpush1.bf16.msra.mxu0 %v1094_v22  ;;  %v1152_v1 = vld [vmem:[#allocation5 + $0x184] ss:$8 sps:$4 sm:$0xff]   ;;  %v1155_v3 = vld [vmem:[#allocation5 + $0x180] ss:$8 sps:$4 sm:$0xff]   ;;  %v1158_v6 = vld [vmem:[#allocation5 + $0x274] ss:$8 sps:$4 sm:$0xff]   ;;  %v62_v8 = vpack.c.bf16 %v55_v5, %v55_v5 }
  0x3c   :  { %711 = vmatpush1.bf16.msra.mxu1 %v1095_v23  ;;  %671 = vmatprep.subr.bf16.mxu0 %v1096_v24  ;;  %v53_v4 = vld [vmem:[#allocation2] sm:$0xff]  ;;  %v1156_v9 = vld [vmem:[#allocation5 + $0x270] ss:$8 sps:$4 sm:$0xff]   ;;  %v1164_v17 = vld [vmem:[#allocation5 + $0x254] ss:$8 sps:$4 sm:$0xff]   ;;  %s943_s2 = sshll.u32 %s1304_s0, 4  ;;  %s944_s2 = int_to_ptr.vmem [resolvable:$true] %s943_s2 }
  0x3d   :  { %712 = vmatprep.subr.bf16.mxu1 %v1098_v25  ;;  %v60_v7 = vpack.c.bf16 %v53_v4, %v53_v4  ;;  %v1161_v10 = vld [vmem:[#allocation5 + $0x264] ss:$8 sps:$4 sm:$0xff]   ;;  %v1201_v11 = vld [vmem:[#allocation5 + $0x300] ss:$8 sps:$4 sm:$0xff]   ;;  %v58_v13 = vld [vmem:[#allocation2 + $0x28] sm:$0xff]  ;;  %s1271_s28 = scalar_lea.vmem %s944_s2, 256  ;;  %p1276_p2 = scmp.lt.s32.totalorder %s944_s2, %s944_s2 }
  0x3e   :  { %v1203_v12 = vld [vmem:[#allocation5 + $0x304] ss:$8 sps:$4 sm:$0xff]   ;;  %v1159_v14 = vld [vmem:[#allocation5 + $0x260] ss:$8 sps:$4 sm:$0xff]   ;;  %v59_v15 = vld [vmem:[#allocation2 + $0x30] sm:$0xff]  ;;  %v65_v16 = vpack.c.bf16 %v58_v13, %v58_v13  ;;  %p1272_p1 = scmp.ne.s32.totalorder %s944_s2, %s1271_s28  ;;  %p1277_p3 = scmp.lt.s32.totalorder %s1271_s28, %s1271_s28 }
  0x3f   :  { %672 = vmatpush1.bf16.msra.mxu0 %v1100_v26  ;;  %v66_v19 = vpack.c.bf16 %v59_v15, %v59_v15  ;;  %v1162_v20 = vld [vmem:[#allocation5 + $0x250] ss:$8 sps:$4 sm:$0xff]   ;;  %v1167_v21 = vld [vmem:[#allocation5 + $0x244] ss:$8 sps:$4 sm:$0xff]   ;;  %v1165_v22 = vld [vmem:[#allocation5 + $0x240] ss:$8 sps:$4 sm:$0xff]  }
  0x40   :  { %713 = vmatpush1.bf16.msra.mxu1 %v1101_v27  ;;  %673 = vmatprep.subr.bf16.mxu0 %v1102_v28  ;;  %v1170_v23 = vld [vmem:[#allocation5 + $0x234] ss:$8 sps:$4 sm:$0xff]   ;;  %v1168_v24 = vld [vmem:[#allocation5 + $0x230] ss:$8 sps:$4 sm:$0xff]   ;;  %v1173_v25 = vld [vmem:[#allocation5 + $0x224] ss:$8 sps:$4 sm:$0xff]   ;;  %p1278_p4 = por %p1277_p3, %p1276_p2 }
  0x41   :  { %714 = vmatprep.subr.bf16.mxu1 %v1104_v29  ;;  %v1171_v26 = vld [vmem:[#allocation5 + $0x220] ss:$8 sps:$4 sm:$0xff]   ;;  %v1176_v27 = vld [vmem:[#allocation5 + $0x214] ss:$8 sps:$4 sm:$0xff]   ;;  %v1174_v28 = vld [vmem:[#allocation5 + $0x210] ss:$8 sps:$4 sm:$0xff]  }
  0x42   :  { %v1179_v29 = vld [vmem:[#allocation5 + $0x204] ss:$8 sps:$4 sm:$0xff]   ;;  %v1204_v46 = vld [vmem:[#allocation5 + $0x280] ss:$8 sps:$4 sm:$0xff]   ;;  %p1279_p5 = pnand %p1278_p4, %p1272_p1 }
  0x43   :  { %674 = vmatpush1.bf16.msra.mxu0 %v1106_v30  ;;  %v1177_v30 = vld [vmem:[#allocation5 + $0x200] ss:$8 sps:$4 sm:$0xff]  }
  0x44   :  { %715 = vmatpush1.bf16.msra.mxu1 %v1107_v31  ;;  %675 = vmatprep.subr.bf16.mxu0 %v1108_v32  ;;  %v1182_v31 = vld [vmem:[#allocation5 + $0x2f4] ss:$8 sps:$4 sm:$0xff]   ;;  %v1180_v32 = vld [vmem:[#allocation5 + $0x2f0] ss:$8 sps:$4 sm:$0xff]  }
  0x45   :  { %716 = vmatprep.subr.bf16.mxu1 %v1110_v33  ;;  %v1185_v33 = vld [vmem:[#allocation5 + $0x2e4] ss:$8 sps:$4 sm:$0xff]  }
  0x47   :  { %676 = vmatpush2.bf16.msra.mxu0 %v1112_v34  ;;  %v1183_v34 = vld [vmem:[#allocation5 + $0x2e0] ss:$8 sps:$4 sm:$0xff]  }
  0x48   :  { %717 = vmatpush2.bf16.msra.mxu1 %v1113_v35  ;;  %677 = vmatprep.subr.bf16.mxu0 %v1114_v36  ;;  %v1188_v35 = vld [vmem:[#allocation5 + $0x2d4] ss:$8 sps:$4 sm:$0xff]   ;;  %v1186_v36 = vld [vmem:[#allocation5 + $0x2d0] ss:$8 sps:$4 sm:$0xff]  }
  0x49   :  { %718 = vmatprep.subr.bf16.mxu1 %v1116_v37  ;;  %v1191_v37 = vld [vmem:[#allocation5 + $0x2c4] ss:$8 sps:$4 sm:$0xff]  }
  0x4b   :  { %678 = vmatpush2.bf16.msra.mxu0 %v1118_v38  ;;  %v1189_v38 = vld [vmem:[#allocation5 + $0x2c0] ss:$8 sps:$4 sm:$0xff]  }
  0x4c   :  { %719 = vmatpush2.bf16.msra.mxu1 %v1119_v39  ;;  %679 = vmatprep.subr.bf16.mxu0 %v1120_v40  ;;  %v1194_v39 = vld [vmem:[#allocation5 + $0x2b4] ss:$8 sps:$4 sm:$0xff]   ;;  %v1192_v40 = vld [vmem:[#allocation5 + $0x2b0] ss:$8 sps:$4 sm:$0xff]  }
  0x4d   :  { %720 = vmatprep.subr.bf16.mxu1 %v1122_v41  ;;  %v1197_v41 = vld [vmem:[#allocation5 + $0x2a4] ss:$8 sps:$4 sm:$0xff]  }
  0x4f   :  { %680 = vmatpush2.bf16.msra.mxu0 %v1124_v42  ;;  %v1195_v42 = vld [vmem:[#allocation5 + $0x2a0] ss:$8 sps:$4 sm:$0xff]  }
  0x50   :  { %721 = vmatpush2.bf16.msra.mxu1 %v1125_v43  ;;  %681 = vmatprep.subr.bf16.mxu0 %v1126_v44  ;;  %v1200_v43 = vld [vmem:[#allocation5 + $0x294] ss:$8 sps:$4 sm:$0xff]   ;;  %v1198_v44 = vld [vmem:[#allocation5 + $0x290] ss:$8 sps:$4 sm:$0xff]  }
  0x51   :  { %722 = vmatprep.subr.bf16.mxu1 %v1128_v45  ;;  %v1206_v45 = vld [vmem:[#allocation5 + $0x284] ss:$8 sps:$4 sm:$0xff]  }
  0x53   :  { %682 = vmatpush2.bf16.msra.mxu0 %v1130_v47  ;;  %v57_v47 = vld [vmem:[#allocation2 + $0x20] sm:$0xff] }
  0x54   :  { %723 = vmatpush2.bf16.msra.mxu1 %v1131_v48  ;;  %683 = vmatprep.subr.bf16.mxu0 %v1132_v51  ;;  %v64_v48 = vpack.c.bf16 %v57_v47, %v57_v47  ;;  %v870_v47 = vlaneseq }
  0x55   :  { %724 = vmatprep.subr.bf16.mxu1 %v1134_v53 }
  0x57   :  { %684 = vmatpush2.bf16.msra.mxu0 %v1136_v54 }
  0x58   :  { %725 = vmatpush2.bf16.msra.mxu1 %v1137_v55  ;;  %685 = vmatprep.subr.bf16.mxu0 %v1138_v56 }
  0x59   :  { %726 = vmatprep.subr.bf16.mxu1 %v1140_v57 }
  0x5b   :  { %686 = vmatpush2.bf16.msra.mxu0 %v1142_v58 }
  0x5c   :  { %727 = vmatpush2.bf16.msra.mxu1 %v1143_v59  ;;  %687 = vmatprep.subr.bf16.mxu0 %v1144_v60 }
  0x5d   :  { %728 = vmatprep.subr.bf16.mxu1 %v1146_v61 }
  0x5f   :  { %688 = vmatpush2.bf16.msra.mxu0 %v1148_v62 }
  0x60   :  { %729 = vmatpush2.bf16.msra.mxu1 %v1149_v63  ;;  %689 = vmatprep.subr.bf16.mxu0 %v1150_v0 }
  0x61   :  { %730 = vmatprep.subr.bf16.mxu1 %v1152_v1 }
  0x63   :  { %690 = vmatpush2.bf16.msra.mxu0 %v1154_v2 }
  0x64   :  { %731 = vmatpush2.bf16.msra.mxu1 %v1155_v3  ;;  %741 = vmatprep.subr.bf16.mxu0 %v1158_v6 }
  0x65   :  { %796 = vmatprep.subr.bf16.mxu1 %v1203_v12 }
  0x66   :  { %692 = vmatmul.mubr.bf16.vlgmr.msra.gmra.mxu0 %v60_v7 }
  0x67   :  { %733 = vmatmul.mubr.bf16.vlgmr.msra.gmra.mxu1 %v62_v8  ;;  %742 = vmatpush1.bf16.msra.mxu0 %v1156_v9 }
  0x68   :  { %743 = vmatprep.subr.bf16.mxu0 %v1161_v10  ;;  %797 = vmatpush1.bf16.msra.mxu1 %v1201_v11 }
  0x69   :  { %814 = vmatprep.mubr.bf16.mxu1 %v1302_v18  ;;  %773 = vmatprep.mubr.bf16.mxu0 %v65_v16 }
  0x6b   :  { %744 = vmatpush1.bf16.msra.mxu0 %v1159_v14 }
  0x6c   :  { %745 = vmatprep.subr.bf16.mxu0 %v1164_v17 }
  0x6f   :  { %1051 = vmatmul.mubr.msk.bf16.vlgmr.msra.gmra.mxu1 %vm655_vm0, %v66_v19  ;;  %746 = vmatpush1.bf16.msra.mxu0 %v1162_v20 }
  0x70   :  { %747 = vmatprep.subr.bf16.mxu0 %v1167_v21 }
  0x73   :  { %748 = vmatpush1.bf16.msra.mxu0 %v1165_v22 }
  0x74   :  { %749 = vmatprep.subr.bf16.mxu0 %v1170_v23 }
  0x77   :  { %750 = vmatpush1.bf16.msra.mxu0 %v1168_v24 }
  0x78   :  { %751 = vmatprep.subr.bf16.mxu0 %v1173_v25 }
  0x7b   :  { %752 = vmatpush1.bf16.msra.mxu0 %v1171_v26 }
  0x7c   :  { %753 = vmatprep.subr.bf16.mxu0 %v1176_v27 }
  0x7f   :  { %754 = vmatpush1.bf16.msra.mxu0 %v1174_v28 }
  0x80   :  { %755 = vmatprep.subr.bf16.mxu0 %v1179_v29 }
  0x83   :  { %756 = vmatpush1.bf16.msra.mxu0 %v1177_v30 }
  0x84   :  { %757 = vmatprep.subr.bf16.mxu0 %v1182_v31 }
  0x87   :  { %758 = vmatpush2.bf16.msra.mxu0 %v1180_v32 }
  0x88   :  { %759 = vmatprep.subr.bf16.mxu0 %v1185_v33 }
  0x8b   :  { %760 = vmatpush2.bf16.msra.mxu0 %v1183_v34 }
  0x8c   :  { %761 = vmatprep.subr.bf16.mxu0 %v1188_v35 }
  0x8f   :  { %762 = vmatpush2.bf16.msra.mxu0 %v1186_v36 }
  0x90   :  { %763 = vmatprep.subr.bf16.mxu0 %v1191_v37 }
  0x93   :  { %764 = vmatpush2.bf16.msra.mxu0 %v1189_v38 }
  0x94   :  { %765 = vmatprep.subr.bf16.mxu0 %v1194_v39 }
  0x97   :  { %766 = vmatpush2.bf16.msra.mxu0 %v1192_v40 }
  0x98   :  { %767 = vmatprep.subr.bf16.mxu0 %v1197_v41 }
  0x9b   :  { %768 = vmatpush2.bf16.msra.mxu0 %v1195_v42 }
  0x9c   :  { %769 = vmatprep.subr.bf16.mxu0 %v1200_v43 }
  0x9f   :  { %770 = vmatpush2.bf16.msra.mxu0 %v1198_v44 }
  0xa0   :  { %771 = vmatprep.subr.bf16.mxu0 %v1206_v45  ;;  %v1303_v45 = vmov 1983009808  }
  0xa3   :  { %772 = vmatpush2.bf16.msra.mxu0 %v1204_v46  ;;  %v868_v46 = vunpack.c.l.s4 %v1303_v45 }
  0xa6   :  { %774 = vmatmul.mubr.bf16.vlgmr.msra.gmra.mxu0 %v64_v48  ;;  %v869_v48 = vunpack.c.0.s8 %v868_v46 }
 0x126   :  { %v693_v49 = vpop.f32.mrf.mxu0 }
 0x127   :  { %v734_v50 = vpop.f32.mrf.mxu1 }
 0x128   :  { %v735_v51 = vadd.f32 %v734_v50, %v693_v49  ;;  %v695_v52 = vpop.f32.mrf.mxu0  ;;  %v871_v49 = vshrl.u32 %v870_v47, 7 }
 0x129   :  { %v736_v53 = vpop.f32.mrf.mxu1 }
 0x12a   :  { %v697_v54 = vpop.f32.mrf.mxu0  ;;  %v737_v63 = vadd.f32 %v736_v53, %v695_v52 }
 0x12b   :  { %v738_v55 = vpop.f32.mrf.mxu1  ;;  %v863_v54 = vld [vmem:[#allocation7] sm:$0xf] }
 0x12c   :  { %v698_v56 = vpop.f32.mrf.mxu0 }
 0x12d   :  { %v739_v57 = vpop.f32.mrf.mxu1  ;;  %v879_v56 = vsub.s32 0, %v871_v49 }
 0x12e   :  { %v883_v57 = vsub.s32 2, %v871_v49 }
 0x12f   :  { %v816_v58 = vpop.f32.mrf.mxu1 }
 0x131   :  { %v818_v59 = vpop.f32.mrf.mxu1 }
 0x133   :  { %v820_v60 = vpop.f32.mrf.mxu1 }
 0x135   :  { %v821_v61 = vpop.f32.mrf.mxu1 }
 0x166   :  { %v775_v62 = vpop.f32.mrf.mxu0 }
 0x167   :  { %v776_v0 = vadd.f32 %v775_v62, %v735_v51  ;;  %v872_v51 = vsub.s32 %v869_v48, %v871_v49 }
 0x168   :  { %v777_v1 = vpop.f32.mrf.mxu0 }
 0x169   :  { %v1334_v2 = vadd.f32 %v816_v58, %v776_v0  ;;  %v778_v3 = vadd.f32 %v777_v1, %v737_v63 }
 0x16a   :  { %v779_v4 = vpop.f32.mrf.mxu0 }
 0x16b   :  { %v823_v5 = vrot.slane %v1334_v2, 4  ;;  %v835_v6 = vmul.f32 %v1334_v2, %v1334_v2  ;;  %v1339_v7 = vadd.f32 %v818_v59, %v778_v3  ;;  %v915_v3 = vsub.s32 1, %v871_v49 }
 0x16c   :  { %v780_v8 = vpop.f32.mrf.mxu0  ;;  %v919_v4 = vsub.s32 3, %v871_v49 }
 0x16d   :  { %v824_v9 = vadd.f32 %v823_v5, %v1334_v2  ;;  %v837_v10 = vrot.slane %v835_v6, 4  ;;  %v829_v11 = vrot.slane %v1339_v7, 4  ;;  %v836_v12 = vmul.f32 %v1339_v7, %v1339_v7 }
 0x16f   :  { %v825_v13 = vrot.slane %v824_v9, 2  ;;  %v838_v14 = vadd.f32 %v837_v10, %v835_v6  ;;  %v830_v15 = vadd.f32 %v829_v11, %v1339_v7  ;;  %v843_v16 = vrot.slane %v836_v12, 4 }
 0x171   :  { %v826_v17 = vadd.f32 %v825_v13, %v824_v9  ;;  %v839_v18 = vrot.slane %v838_v14, 2  ;;  %v831_v19 = vrot.slane %v830_v15, 2  ;;  %v844_v20 = vadd.f32 %v843_v16, %v836_v12 }
 0x173   :  { %v827_v21 = vrot.slane %v826_v17, 1  ;;  %v840_v22 = vadd.f32 %v839_v18, %v838_v14  ;;  %v832_v23 = vadd.f32 %v831_v19, %v830_v15  ;;  %v845_v24 = vrot.slane %v844_v20, 2 }
 0x175   :  { %v828_v25 = vadd.f32 %v827_v21, %v826_v17  ;;  %v841_v26 = vrot.slane %v840_v22, 1  ;;  %v833_v27 = vrot.slane %v832_v23, 1  ;;  %v846_v28 = vadd.f32 %v845_v24, %v844_v20 }
 0x177   :  { %v842_v29 = vadd.f32 %v841_v26, %v840_v22  ;;  %v849_v30 = vmul.f32 0.125, %v828_v25  ;;  %v834_v31 = vadd.f32 %v833_v27, %v832_v23  ;;  %v847_v32 = vrot.slane %v846_v28, 1 }
 0x179   :  { %v851_v33 = vmul.f32 0.125, %v842_v29  ;;  %v853_v34 = vmul.f32 %v849_v30, %v849_v30  ;;  %v848_v35 = vadd.f32 %v847_v32, %v846_v28  ;;  %v850_v36 = vmul.f32 0.125, %v834_v31 }
 0x17b   :  { %v855_v37 = vsub.f32 %v851_v33, %v853_v34  ;;  %v852_v38 = vmul.f32 0.125, %v848_v35  ;;  %v854_v39 = vmul.f32 %v850_v36, %v850_v36 }
 0x17d   :  { %v857_v40 = vmax.f32 %v855_v37, 0.0  ;;  %v856_v41 = vsub.f32 %v852_v38, %v854_v39 }
 0x17f   :  { %v859_v42 = vadd.f32 1e-05, %v857_v40  ;;  %v858_v43 = vmax.f32 %v856_v41, 0.0 }
 0x181   :  { %v860_v44 = vadd.f32 1e-05, %v858_v43  ;;  %1207 = vrsqrt.f32 %v859_v42 }
 0x183   :  { %1209 = vrsqrt.f32 %v860_v44 }
 0x18e   :  { %v1208_v50 = vpop.eup %1207 }
 0x190   :  { %v1210_v52 = vpop.eup %1209 }
 0x191   :  { %v866_v53 = vcombine.low %v1208_v50, %v1210_v52 }
 0x193   :  { %v873_v55 = vrot.slane %v866_v53, %v872_v51 }
 0x195   :  { %v875_v58 = vmul.f32 %v873_v55, %v863_v54 }
 0x197   :  { %v880_v59 = vrot.slane %v875_v58, %v879_v56  ;;  %v884_v60 = vrot.slane %v875_v58, %v883_v57 }
 0x199   :  { %v887_v61 = vmul.f32 %v880_v59, %v849_v30  ;;  %v888_v62 = vmul.f32 %v884_v60, %v850_v36  ;;  %v905_v6 = vrot.slane %v880_v59, %v879_v56  ;;  %v909_v8 = vrot.slane %v884_v60, %v879_v56 }
 0x19b   :  { %v891_v63 = vcombine.low %v887_v61, %v888_v62  ;;  %v910_v11 = vmul.f32 %v905_v6, %v1334_v2  ;;  %v911_v12 = vmul.f32 %v909_v8, %v1339_v7 }
 0x19d   :  { %v898_v0 = vrot.slane %v891_v63, %v872_v51 }
 0x19f   :  { %v899_v1 = vrot.slane %v898_v0, 7 }
 0x1a1   :  { %v901_v5 = vsub.f32 %v863_v54, %v899_v1 }
 0x1a3   :  { %v916_v9 = vrot.slane %v901_v5, %v915_v3  ;;  %v920_v10 = vrot.slane %v901_v5, %v919_v4 }
 0x1a5   :  { %v926_v13 = vrot.slane %v916_v9, %v915_v3  ;;  %v930_v14 = vrot.slane %v920_v10, %v915_v3 }
 0x1a7   :  { %v931_v15 = vadd.f32 %v926_v13, %v910_v11  ;;  %v932_v16 = vadd.f32 %v930_v14, %v911_v12 }
 0x1a9   :  { %v933_v17 = vmax.f32 %v931_v15, 0.0  ;;  %v934_v18 = vmax.f32 %v932_v16, 0.0 }
 0x1ab   :  { %935 = vst [vmem:[#allocation8] sm:$0xff] %v933_v17  ;;  %936 = vst [vmem:[#allocation8 + $0x8] sm:$0xff] %v934_v18 }
 0x1ac   :  { %1282 = shalt.err (!%p1279_p5)
}
 0x1ad   :  { %946 = dma.vmem_to_hbm [thread:$0]  %s944_s2, 256, %s1354_s3, [#allocation4]  }
 0x1ae   :  { %1295 = dma.done.wait [#allocation4], 256  }
 0x1af   :  { %1296 = vsyncadd [#allocation4], 4294967040 }
 0x1b0   :  { %950 = vsyncpa [#allocation3], 1 }
 0x1b1   :  { %951 = vsyncpa [#allocation6], 1 }
 0x1b2   :  { %952 = vsyncpa [#allocation4], 1 }

</bundles_post_ra>
